<compile_context>
chip_gen: v7x
topology: tpu7x:2x2x1
jax: 0.10.0
libtpu: 0.0.40
codegen_flags: <defaults>
</compile_context>

<pallas_src>
import jax
import jax.numpy as jnp
from jax.experimental import pallas as pl
from jax.experimental.pallas import tpu as pltpu


def _ape_kernel(x_ref, pos_ref, o_ref):
    # x_ref:   (TB, TH, W*C)   activation tile (lane-dense last dim)
    # pos_ref: (TB, 1,  W*C)   per-batch positional rows, broadcast over the H tile
    # o_ref:   (TB, TH, W*C)
    o_ref[...] = x_ref[...] + pos_ref[...]


def _largest_divisor_leq(n, cap):
    cap = max(1, min(n, cap))
    for d in range(cap, 0, -1):
        if n % d == 0:
            return d
    return 1


def ape_forward(x, pos_embed, *, target_block_bytes=4 * 1024 * 1024):
    """x: (B, H, W, C), pos_embed: (B, C). Returns x + pos broadcast over H, W."""
    B, H, W, C = x.shape
    assert pos_embed.shape == (B, C), "APE requires num_patches == B and embed_dim == C"

    lane = W * C                                     # fold W into the lane axis
    itemsize = jnp.dtype(x.dtype).itemsize
    x2 = x.reshape(B, H, lane)
    # pos_tiled[b, 0, w*C + c] == pos_embed[b, c]; tiny (B*W*C elements), built once.
    pos_tiled = jnp.tile(pos_embed.astype(x.dtype), (1, W)).reshape(B, 1, lane)

    # ---- Tile selection ------------------------------------------------------
    row_bytes = H * lane * itemsize                  # one full batch row (TH == H)
    if row_bytes <= target_block_bytes:
        # Whole-H blocks; pack as many batch rows as fit, but keep >= 2 grid
        # steps along the batch axis (when B >= 2) so both v7x TCs get work.
        tb_cap = max(1, target_block_bytes // row_bytes)
        if B >= 2:
            tb_cap = max(1, min(tb_cap, B // 2))
        tb = _largest_divisor_leq(B, tb_cap)
        th = H
    else:
        # Single batch row per block; split H into sublane-aligned chunks.
        tb = 1
        th = H
        th_cap = max(1, target_block_bytes // (lane * itemsize))
        for cand in range(min(H, th_cap), 0, -1):
            if H % cand == 0 and (cand % 8 == 0 or cand == H):
                th = cand
                break

    grid = (B // tb, H // th)

    out2 = pl.pallas_call(
        _ape_kernel,
        out_shape=jax.ShapeDtypeStruct((B, H, lane), x.dtype),
        grid_spec=pltpu.PrefetchScalarGridSpec(
            num_scalar_prefetch=0,
            grid=grid,
            in_specs=[
                pl.BlockSpec((tb, th, lane), lambda b, h: (b, h, 0)),
                pl.BlockSpec((tb, 1, lane), lambda b, h: (b, 0, 0)),
            ],
            out_specs=pl.BlockSpec((tb, th, lane), lambda b, h: (b, h, 0)),
        ),
        compiler_params=pltpu.CompilerParams(
            dimension_semantics=("parallel", "parallel"),
            vmem_limit_bytes=32 * 1024 * 1024,
        ),
    )(x2, pos_tiled)

    return out2.reshape(B, H, W, C)


def init_ape_params(key, num_patches, embed_dim, std=0.02):
    # Deterministic stand-in for trunc_normal_(std=0.02): normal clipped to +/- 2*std.
    w = jax.random.normal(key, (num_patches, embed_dim), dtype=jnp.float32) * std
    return jnp.clip(w, -2.0 * std, 2.0 * std)


if __name__ == "__main__":
    # Small shapes consistent with the module: B == num_patches, C == embed_dim.
    B, H, W, C = 4, 16, 16, 32   # num_patches=4, embed_dim=32

    key = jax.random.PRNGKey(0)
    kx, kp = jax.random.split(key)

    x = jax.random.normal(kx, (B, H, W, C), dtype=jnp.float32)
    pos_embed = init_ape_params(kp, num_patches=B, embed_dim=C)

    ape = jax.jit(ape_forward)
    out = ape(x, pos_embed)
    out = jax.block_until_ready(out)

    # Reference check in plain JAX.
    ref = x + pos_embed[:, None, None, :]
    assert out.shape == (B, H, W, C)
    assert jnp.allclose(out, ref, atol=1e-6), "mismatch vs reference"

    print("KERNEL_OK")
</pallas_src>

<mosaic_0001>
module attributes {stable_mosaic.version = 11 : i64} {
  func.func @_ape_kernel(%arg0: i32, %arg1: i32, %arg2: memref<2x16x512xf32, #tpu.memory_space<vmem>>, %arg3: memref<2x1x512xf32, #tpu.memory_space<vmem>>, %arg4: memref<2x16x512xf32, #tpu.memory_space<vmem>>) attributes {dimension_semantics = [#tpu.dimension_semantics<parallel>, #tpu.dimension_semantics<parallel>], iteration_bounds = array<i64: 2, 1>, scalar_prefetch = 0 : i64, scratch_operands = 0 : i64, tpu.core_type = #tpu.core_type<tc>, window_params = [{transform_indices = @transform_0, window_bounds = array<i64: 2, 16, 512>}, {transform_indices = @transform_1, window_bounds = array<i64: 2, 1, 512>}, {transform_indices = @transform_2, window_bounds = array<i64: 2, 16, 512>}]} {
    %c0 = arith.constant 0 : index
    %c0_0 = arith.constant 0 : index
    %c0_1 = arith.constant 0 : index
    %0 = vector.load %arg2[%c0, %c0_0, %c0_1] : memref<2x16x512xf32, #tpu.memory_space<vmem>>, vector<2x16x512xf32>
    %c0_2 = arith.constant 0 : index
    %c0_3 = arith.constant 0 : index
    %c0_4 = arith.constant 0 : index
    %1 = vector.load %arg3[%c0_2, %c0_3, %c0_4] : memref<2x1x512xf32, #tpu.memory_space<vmem>>, vector<2x1x512xf32>
    %2 = vector.broadcast %1 : vector<2x1x512xf32> to vector<2x16x512xf32>
    %3 = arith.addf %0, %2 : vector<2x16x512xf32>
    %c0_5 = arith.constant 0 : index
    %c0_6 = arith.constant 0 : index
    %c0_7 = arith.constant 0 : index
    %4 = vector.load %arg4[%c0_5, %c0_6, %c0_7] : memref<2x16x512xf32, #tpu.memory_space<vmem>>, vector<2x16x512xf32>
    tpu.vector_store %arg4[%c0_5, %c0_6, %c0_7], %3 {strides = array<i32>} : memref<2x16x512xf32, #tpu.memory_space<vmem>>, vector<2x16x512xf32>,
    return
  }
  func.func @transform_0(%arg0: i32, %arg1: i32) -> (i32, i32, i32) {
    %c0_i32 = arith.constant 0 : i32
    %c0_i32_0 = arith.constant 0 : i32
    return %arg0, %arg1, %c0_i32 : i32, i32, i32
  }
  func.func @transform_1(%arg0: i32, %arg1: i32) -> (i32, i32, i32) {
    %c0_i32 = arith.constant 0 : i32
    %c0_i32_0 = arith.constant 0 : i32
    %c0_i32_1 = arith.constant 0 : i32
    return %arg0, %c0_i32, %c0_i32_0 : i32, i32, i32
  }
  func.func @transform_2(%arg0: i32, %arg1: i32) -> (i32, i32, i32) {
    %c0_i32 = arith.constant 0 : i32
    %c0_i32_0 = arith.constant 0 : i32
    return %arg0, %arg1, %c0_i32 : i32, i32, i32
  }
}

</mosaic_0001>

<bundles_post_ra>
// kernel: ape_forward.1
= control target key start
LH: loop header
LB: loop body
LE: loop exit
PB: predicated region body
PF: predicated region fallthrough
CT: control target
= control target key end

     0   :  { %s501_s9 = smov 0   ;;  %s503_s10 = smov 0   ;;  %s573_s0 = inlined_call_operand.vmem [shape: f32[4,16,512], index: 0, kind: input, shape index: {}]   ;;  %s574_s1 = inlined_call_operand.vmem [shape: f32[4,1,512], index: 1, kind: input, shape index: {}]   ;;  %s575_s2 = inlined_call_operand.vmem [shape: f32[4,16,512], index: 2, kind: output, shape index: {}]  }
   0x1   :  { %s505_s11 = smov 0  }
   0x2 LB: > { %s24_s12 = sadd.s32 1, %s480_s10  ;;  %p425_p0 = scmp.ge.s32.totalorder %s484_s11, 1  ;;  %s484_s11 = sphi %s505_s11, %s12_s11   ;;  %s480_s10 = sphi %s503_s10, %s577_s10   ;;  %s476_s9 = sphi %s501_s9, %s576_s9  }
   0x3   : > { %p26_p1 = scmp.ge.s32.totalorder %s24_s12, 2  ;;  %p147_p2 = scmp.lt.s32.totalorder %s484_s11, 3 }
   0x5   : > { %s579_s12 = smov (%p26_p1, %s24_s12), 0  ;;  %p148_p3 = pnand %p425_p0, %p147_p2 }
   0x6   : > { %s426_s13 = sshll.u32 (!%p148_p3), %s476_s9, 1  ;;  %v238_v0 = vlaneseq (!%p148_p3) }
   0x7   : > { %151 = sbr.rel (%p148_p3) target bundleno = 31 (0x1f), region = 28  ;;  %p188_p4 = scmp.lt.s32.totalorder (!%p148_p3), %s426_s13, 3 }
   0x8   : > { %v239_v1 = vshrl.u32 (!%p148_p3), %v238_v0, 7 }
   0xa   : > { %v240_v2 = vsub.s32 (!%p148_p3), 0, %v239_v1  ;;  %v244_v3 = vsub.s32 (!%p148_p3), 1, %v239_v1  ;;  %v248_v4 = vsub.s32 (!%p148_p3), 2, %v239_v1  ;;  %v252_v5 = vsub.s32 (!%p148_p3), 3, %v239_v1 }
   0xe   : > { %s581_s13 = smov (!%p188_p4, %s426_s13), 3 }
   0xf   : > { %s436_s14 = sshll.u32 %s581_s13, 6  ;;  %s430_s15 = sshll.u32 %s581_s13, 2 }
  0x10   : > { %s522_s18 = scalar_lea.vmem %s573_s0, %s436_s14  ;;  %s203_s21 = scalar_lea.vmem %s574_s1, %s430_s15 }
  0x11   : > { %v218_v6 = vld [vmem:[%s522_s18] sm:$0xff]  ;;  %v219_v10 = vld [vmem:[%s522_s18 + $0x8] sm:$0xff]  ;;  %v220_v12 = vld [vmem:[%s522_s18 + $0x10] sm:$0xff]  ;;  %s534_s24 = scalar_lea.vmem %s575_s2, %s436_s14 }
  0x12   : > { %v234_v7 = vld [vmem:[%s203_s21] sm:$0xf]  ;;  %v235_v8 = vld [vmem:[%s203_s21 + $0x4] sm:$0xf]  ;;  %v221_v14 = vld [vmem:[%s522_s18 + $0x18] sm:$0xff] }
  0x13   : > { %v241_v9 = vrot.slane %v234_v7, %v240_v2  ;;  %v245_v11 = vrot.slane %v234_v7, %v244_v3  ;;  %v249_v13 = vrot.slane %v234_v7, %v248_v4  ;;  %v253_v15 = vrot.slane %v234_v7, %v252_v5  ;;  %v222_v16 = vld [vmem:[%s522_s18 + $0x20] sm:$0xff]  ;;  %v223_v17 = vld [vmem:[%s522_s18 + $0x28] sm:$0xff]  ;;  %v224_v18 = vld [vmem:[%s522_s18 + $0x30] sm:$0xff] }
  0x14   : > { %v257_v19 = vrot.slane %v235_v8, %v240_v2  ;;  %v261_v20 = vrot.slane %v235_v8, %v244_v3  ;;  %v265_v21 = vrot.slane %v235_v8, %v248_v4  ;;  %v269_v22 = vrot.slane %v235_v8, %v252_v5  ;;  %v225_v27 = vld [vmem:[%s522_s18 + $0x38] sm:$0xff]  ;;  %v226_v28 = vld [vmem:[%s522_s18 + $0x40] sm:$0xff]  ;;  %v227_v29 = vld [vmem:[%s522_s18 + $0x48] sm:$0xff] }
  0x15   : > { %v278_v23 = vadd.f32 %v241_v9, %v218_v6  ;;  %v279_v24 = vadd.f32 %v245_v11, %v219_v10  ;;  %v280_v25 = vadd.f32 %v249_v13, %v220_v12  ;;  %v281_v26 = vadd.f32 %v253_v15, %v221_v14  ;;  %v228_v34 = vld [vmem:[%s522_s18 + $0x50] sm:$0xff]  ;;  %v229_v35 = vld [vmem:[%s522_s18 + $0x58] sm:$0xff]  ;;  %v230_v36 = vld [vmem:[%s522_s18 + $0x60] sm:$0xff] }
  0x16   : > { %v282_v30 = vadd.f32 %v241_v9, %v222_v16  ;;  %v283_v31 = vadd.f32 %v245_v11, %v223_v17  ;;  %v284_v32 = vadd.f32 %v249_v13, %v224_v18  ;;  %v285_v33 = vadd.f32 %v253_v15, %v225_v27  ;;  %v231_v41 = vld [vmem:[%s522_s18 + $0x68] sm:$0xff]  ;;  %v232_v42 = vld [vmem:[%s522_s18 + $0x70] sm:$0xff]  ;;  %v233_v43 = vld [vmem:[%s522_s18 + $0x78] sm:$0xff] }
  0x17   : > { %294 = vst [vmem:[%s534_s24] sm:$0xff] %v278_v23  ;;  %295 = vst [vmem:[%s534_s24 + $0x8] sm:$0xff] %v279_v24  ;;  %v286_v37 = vadd.f32 %v257_v19, %v226_v28  ;;  %v287_v38 = vadd.f32 %v261_v20, %v227_v29  ;;  %v288_v39 = vadd.f32 %v265_v21, %v228_v34 }
  0x18   : > { %296 = vst [vmem:[%s534_s24 + $0x10] sm:$0xff] %v280_v25  ;;  %297 = vst [vmem:[%s534_s24 + $0x18] sm:$0xff] %v281_v26  ;;  %v289_v40 = vadd.f32 %v269_v22, %v229_v35  ;;  %v290_v44 = vadd.f32 %v257_v19, %v230_v36  ;;  %v291_v45 = vadd.f32 %v261_v20, %v231_v41 }
  0x19   : > { %298 = vst [vmem:[%s534_s24 + $0x20] sm:$0xff] %v282_v30  ;;  %299 = vst [vmem:[%s534_s24 + $0x28] sm:$0xff] %v283_v31  ;;  %v292_v46 = vadd.f32 %v265_v21, %v232_v42  ;;  %v293_v47 = vadd.f32 %v269_v22, %v233_v43 }
  0x1a   : > { %300 = vst [vmem:[%s534_s24 + $0x30] sm:$0xff] %v284_v32  ;;  %301 = vst [vmem:[%s534_s24 + $0x38] sm:$0xff] %v285_v33 }
  0x1b   : > { %302 = vst [vmem:[%s534_s24 + $0x40] sm:$0xff] %v286_v37  ;;  %303 = vst [vmem:[%s534_s24 + $0x48] sm:$0xff] %v287_v38 }
  0x1c   : > { %304 = vst [vmem:[%s534_s24 + $0x50] sm:$0xff] %v288_v39  ;;  %305 = vst [vmem:[%s534_s24 + $0x58] sm:$0xff] %v289_v40 }
  0x1d   : > { %306 = vst [vmem:[%s534_s24 + $0x60] sm:$0xff] %v290_v44  ;;  %307 = vst [vmem:[%s534_s24 + $0x68] sm:$0xff] %v291_v45 }
  0x1e   : > { %308 = vst [vmem:[%s534_s24 + $0x70] sm:$0xff] %v292_v46  ;;  %309 = vst [vmem:[%s534_s24 + $0x78] sm:$0xff] %v293_v47 }
  0x1f PF: > { %s12_s11 = sadd.s32 1, %s484_s11   ;;  %s576_s9 = smov %s480_s10 }
  0x20   : > { %p9_p5 = scmp.ge.s32.totalorder %s12_s11, 4   ;;  %s577_s10 = smov %s579_s12 }
  0x22   :  { %11 = sbr.rel (!%p9_p5) target bundleno = 2 (0x2), region = 61 }

</bundles_post_ra>
